<compile_context>
chip_gen: v6e
topology: v6e:2x2x1
jax: 0.10.0
libtpu: 0.0.40
codegen_flags: <defaults>
</compile_context>

<pallas_src>
import jax
import jax.numpy as jnp
from jax.experimental import pallas as pl
from jax.experimental.pallas import tpu as pltpu


_BLOCK_BYTES = 4 * 1024 * 1024      # target bytes per (tm, tn) block buffer (~roofline knee)
_LANE_ROW_BYTES = 8192              # bytes per block row -> lane cap: 2048 f32 / 4096 bf16
_VMEM_LIMIT_BYTES = 32 * 1024 * 1024  # safe on v5e (default 16 MiB too small) and v7x (64 MiB phys)


def _round_up(v, m):
    return ((v + m - 1) // m) * m


def _round_down(v, m):
    return (v // m) * m


def _balanced_tile(dim, cap, align):
    """Largest tile <= cap (multiple of `align`) splitting `dim` into near-equal
    grid steps; returns the full extent if it fits in one step (always legal)."""
    if dim <= cap:
        return dim
    steps = pl.cdiv(dim, cap)
    return _round_up(pl.cdiv(dim, steps), align)


def _layer_scale_kernel(x_ref, s_ref, o_ref):
    x = x_ref[...].astype(jnp.float32)          # (tm, tn)
    s = s_ref[...].astype(jnp.float32)          # (tm, 1) or (1, tn): VPU broadcast
    o_ref[...] = (x * s).astype(o_ref.dtype)


def layer_scale_2d(x, gamma, *, inplace=False):
    """LayerScale2d forward.  x: (B, C, H, W) NCHW, gamma: (C,).

    `inplace` is accepted for API parity with the PyTorch module but is a
    functional no-op in JAX; use donate_argnums at the jit boundary if the
    caller wants x's HBM buffer reused.  Values are identical either way.
    """
    del inplace
    B, C, H, W = x.shape
    hw = H * W
    itemsize = jnp.dtype(x.dtype).itemsize

    # ---- layout choice: lane-dense fallback for small / ragged spatial dims.
    lane_cap = max(128, _round_down(_LANE_ROW_BYTES // itemsize, 128))
    hw_pad = _round_up(max(hw, 1), 128)
    lane_waste = (hw_pad - hw) / hw_pad          # padded-lane fraction if hw is one lane tile
    use_wide_rows = (hw < 128) or (hw <= lane_cap and lane_waste > 0.15)

    if use_wide_rows:
        # (B, C*H*W): per-lane scale row, broadcast over batch rows.
        M, N = B, C * hw
        x2 = x.reshape(M, N)                                             # free view
        scale = jnp.repeat(gamma.astype(jnp.float32), hw).reshape(1, N)
    else:
        # (B*C, H*W): per-row scale column, broadcast over lanes.
        M, N = B * C, hw
        x2 = x.reshape(M, N)                                             # free view
        scale = jnp.tile(gamma.astype(jnp.float32), B).reshape(M, 1)

    # ---- byte-based, balanced tiling.
    tn = _balanced_tile(N, lane_cap, 128)
    tn_pad = _round_up(tn, 128)
    row_budget = max(8, _round_down(_BLOCK_BYTES // (tn_pad * itemsize), 8))
    tm = _balanced_tile(M, row_budget, 8)
    grid = (pl.cdiv(M, tm), pl.cdiv(N, tn))

    if use_wide_rows:
        s_spec = pl.BlockSpec((1, tn), lambda i, j: (0, j))
    else:
        s_spec = pl.BlockSpec((tm, 1), lambda i, j: (i, 0))

    y2 = pl.pallas_call(
        _layer_scale_kernel,
        out_shape=jax.ShapeDtypeStruct((M, N), x.dtype),
        grid=grid,
        in_specs=[
            pl.BlockSpec((tm, tn), lambda i, j: (i, j)),   # x tile
            s_spec,                                        # scale tile
        ],
        out_specs=pl.BlockSpec((tm, tn), lambda i, j: (i, j)),
        compiler_params=pltpu.CompilerParams(
            dimension_semantics=("parallel", "parallel"),
            vmem_limit_bytes=_VMEM_LIMIT_BYTES,
        ),
    )(x2, scale)
    return y2.reshape(B, C, H, W)


# ----------------------------------------------------------------------------
if __name__ == "__main__":
    key = jax.random.PRNGKey(0)
    kx, kg = jax.random.split(key)

    fwd = jax.jit(layer_scale_2d)
    init_values = 1e-5

    # 1) Small shape consistent with the module (NCHW, like PyTorch).
    B, C, H, W = 2, 4, 16, 16
    x = jax.random.normal(kx, (B, C, H, W), jnp.float32)
    # LayerScale2d init is init_values * ones(dim); perturb per-channel so the
    # check actually exercises the per-channel broadcast.
    gamma = init_values * (1.0 + jax.random.normal(kg, (C,), jnp.float32))
    y = jax.block_until_ready(fwd(x, gamma))
    ref = x * gamma.reshape(1, C, 1, 1)
    assert y.shape == x.shape and y.dtype == x.dtype
    assert jnp.allclose(y, ref, rtol=1e-6, atol=1e-7)

    # 2) Small-spatial FocalNet stage (7x7) -> exercises the (B, C*H*W)
    #    lane-dense fallback layout.
    xs = jax.random.normal(kx, (2, 96, 7, 7), jnp.float32)
    gs = init_values * (1.0 + jax.random.normal(kg, (96,), jnp.float32))
    ys = jax.block_until_ready(fwd(xs, gs))
    refs = xs * gs.reshape(1, 96, 1, 1)
    assert jnp.allclose(ys, refs, rtol=1e-6, atol=1e-7)

    # 3) Larger bf16 shape -> exercises the byte-based tile cap and the
    #    balanced ragged lane tiling / multi-block grid.
    xb = jax.random.normal(kx, (2, 96, 56, 56), jnp.float32).astype(jnp.bfloat16)
    gb = init_values * (1.0 + jax.random.normal(kg, (96,), jnp.float32))
    yb = jax.block_until_ready(fwd(xb, gb))
    refb = (xb.astype(jnp.float32) * gb.reshape(1, 96, 1, 1)).astype(jnp.bfloat16)
    assert yb.dtype == jnp.bfloat16
    assert jnp.allclose(yb.astype(jnp.float32), refb.astype(jnp.float32),
                        rtol=1e-2, atol=1e-8)

    print("KERNEL_OK")
</pallas_src>

<mosaic_0001>
module attributes {stable_mosaic.version = 11 : i64} {
  func.func @_layer_scale_kernel(%arg0: i32, %arg1: i32, %arg2: memref<8x256xf32, #tpu.memory_space<vmem>>, %arg3: memref<8x1xf32, #tpu.memory_space<vmem>>, %arg4: memref<8x256xf32, #tpu.memory_space<vmem>>) attributes {dimension_semantics = [#tpu.dimension_semantics<parallel>, #tpu.dimension_semantics<parallel>], iteration_bounds = array<i64: 1, 1>, scalar_prefetch = 0 : i64, scratch_operands = 0 : i64, tpu.core_type = #tpu.core_type<tc>, window_params = [{transform_indices = @transform_0, window_bounds = array<i64: 8, 256>}, {transform_indices = @transform_1, window_bounds = array<i64: 8, 1>}, {transform_indices = @transform_2, window_bounds = array<i64: 8, 256>}]} {
    %c0 = arith.constant 0 : index
    %c0_0 = arith.constant 0 : index
    %0 = vector.load %arg2[%c0, %c0_0] : memref<8x256xf32, #tpu.memory_space<vmem>>, vector<8x256xf32>
    %c0_1 = arith.constant 0 : index
    %c0_2 = arith.constant 0 : index
    %1 = vector.load %arg3[%c0_1, %c0_2] : memref<8x1xf32, #tpu.memory_space<vmem>>, vector<8x1xf32>
    %2 = vector.broadcast %1 : vector<8x1xf32> to vector<8x256xf32>
    %3 = arith.mulf %0, %2 : vector<8x256xf32>
    %c0_3 = arith.constant 0 : index
    %c0_4 = arith.constant 0 : index
    %4 = vector.load %arg4[%c0_3, %c0_4] : memref<8x256xf32, #tpu.memory_space<vmem>>, vector<8x256xf32>
    tpu.vector_store %arg4[%c0_3, %c0_4], %3 {strides = array<i32>} : memref<8x256xf32, #tpu.memory_space<vmem>>, vector<8x256xf32>,
    return
  }
  func.func @transform_0(%arg0: i32, %arg1: i32) -> (i32, i32) {
    %c0_i32 = arith.constant 0 : i32
    return %arg0, %arg1 : i32, i32
  }
  func.func @transform_1(%arg0: i32, %arg1: i32) -> (i32, i32) {
    %c0_i32 = arith.constant 0 : i32
    %c0_i32_0 = arith.constant 0 : i32
    return %arg0, %c0_i32 : i32, i32
  }
  func.func @transform_2(%arg0: i32, %arg1: i32) -> (i32, i32) {
    %c0_i32 = arith.constant 0 : i32
    return %arg0, %arg1 : i32, i32
  }
}

</mosaic_0001>

<bundles_post_ra>
// kernel: tile.8
= control target key start
LH: loop header
LB: loop body
LE: loop exit
PB: predicated region body
PF: predicated region fallthrough
CT: control target
= control target key end

     0   :  { %s22_s0 = inlined_call_operand.vmem [shape: f32[4], index: 0, kind: input, shape index: {}]   ;;  %s23_s1 = inlined_call_operand.vmem [shape: f32[2,4], index: 1, kind: output, shape index: {}]  }
   0x1   :  { %v4_v0 = vld [vmem:[%s22_s0] ss:$0 sm:$0xff] }
   0x2   :  { %5 = vst [vmem:[%s23_s1] sm:$0x3] %v4_v0 }

// kernel: tile.0
= control target key start
LH: loop header
LB: loop body
LE: loop exit
PB: predicated region body
PF: predicated region fallthrough
CT: control target
= control target key end

     0   :  { %s35_s8 = smov 125   ;;  %vm8_vm0 = vcmask 7168   ;;  %s36_s11 = smov 126   ;;  %s62_s0 = inlined_call_operand.vmem [shape: f32[2,4], index: 0, kind: input, shape index: {}]   ;;  %s63_s1 = inlined_call_operand.vmem [shape: f32[8,1], index: 1, kind: output, shape index: {}]  }
   0x1   :  { %v5_v0 = vld [vmem:[%s62_s0] sm:$0x3]  ;;  %s34_s0 = smov 127  }
   0x2   :  { %6 = vst [vmem:[#allocation0] sm:$0x3] %v5_v0 }
   0x9   :  { %v10_v1 = vld [vmem:[#allocation0] sm:$0x3]  }
   0xa   :  { %v22_v2 = vld [vmem:[#allocation0] sm:$0x3]   ;;  %11 = vrot.lane.b32.xlu0 %v10_v1, %s34_s0 }
   0xb   :  { %23 = vrot.lane.b32.xlu1 %v22_v2, %s35_s8  ;;  %v7_v3 = vld [vmem:[#allocation0] sm:$0x3]  }
   0xc   :  { %v16_v4 = vld [vmem:[#allocation0] sm:$0x3]   ;;  %9 = vst.msk [vmem:[%s63_s1] ss:$4 sm:$0x3] %vm8_vm0, %v7_v3  }
   0xe   :  { %17 = vrot.lane.b32.xlu0 %v16_v4, %s36_s11 }
  0x7c   :  { %v12_v5 = vpop.permute.xlu0 %11  }
  0x7d   :  { %v24_v6 = vpop.permute.xlu1 %23   ;;  %28 = vst.msk [vmem:[%s63_s1 + $0x1] ss:$4 sm:$0x3] %vm8_vm0, %v12_v5  }
  0x7e   :  { %30 = vst.msk [vmem:[%s63_s1 + $0x3] ss:$4 sm:$0x3] %vm8_vm0, %v24_v6  }
  0x80   :  { %v18_v7 = vpop.permute.xlu0 %17  }
  0x81   :  { %29 = vst.msk [vmem:[%s63_s1 + $0x2] ss:$4 sm:$0x3] %vm8_vm0, %v18_v7  }

// kernel: layer_scale_2d.1
= control target key start
LH: loop header
LB: loop body
LE: loop exit
PB: predicated region body
PF: predicated region fallthrough
CT: control target
= control target key end

     0   :  { %v29_v0 = vmov 0   ;;  %s60_s1 = inlined_call_operand.vmem [shape: f32[8,1], index: 1, kind: input, shape index: {}]   ;;  %s61_s0 = inlined_call_operand.vmem [shape: f32[8,256], index: 0, kind: input, shape index: {}]   ;;  %s62_s2 = inlined_call_operand.vmem [shape: f32[8,256], index: 2, kind: output, shape index: {}]  }
   0x1   :  { %28 = vset.pattern.permute.xlu0 %v29_v0  ;;  %v13_v1 = vld [vmem:[%s60_s1] sm:$0xff]  ;;  %v12_v3 = vld [vmem:[%s61_s0 + $0x8] sm:$0xff] }
   0x2   :  { %16 = vperm.xlu0 %28, %v13_v1   ;;  %v11_v2 = vld [vmem:[%s61_s0] sm:$0xff] }
  0x7d   :  { %v17_v4 = vpop.permute.xlu0 %16 }
  0x7e   :  { %v19_v5 = vmul.f32 %v17_v4, %v11_v2  ;;  %v20_v6 = vmul.f32 %v17_v4, %v12_v3 }
  0x80   :  { %21 = vst [vmem:[%s62_s2] sm:$0xff] %v19_v5  ;;  %22 = vst [vmem:[%s62_s2 + $0x8] sm:$0xff] %v20_v6 }

</bundles_post_ra>
